<compile_context>
chip_gen: v5e
topology: v5e:2x2
jax: 0.10.0
libtpu: 0.0.40
codegen_flags: <defaults>
</compile_context>

<pallas_src>
import functools

import jax
import jax.numpy as jnp
from jax.experimental import pallas as pl
from jax.experimental.pallas import tpu as pltpu

_SMOOTH = 1.0
_LANES = 128


def _soft_dice_kernel(x_ref, y_ref, oi_ref, os_ref, acc_i, acc_s, *,
                      rows, row_tile, acc_rows, any_mask):
    """Grid = (samples, splits, chunks); chunks is the reduction axis.

    x_ref / y_ref : (1, row_tile, 128) VMEM tiles of logits / targets
    oi_ref/os_ref : (1, 1, 1, 128) VMEM blocks — per-(sample, split) partial
                    sums of x*y and x+y (scalar broadcast over lanes)
    acc_i, acc_s  : (acc_rows, 128) f32 VMEM accumulators
    """
    s = pl.program_id(1)
    c = pl.program_id(2)
    cps = pl.num_programs(2)

    @pl.when(c == 0)
    def _():
        acc_i[...] = jnp.zeros_like(acc_i)
        acc_s[...] = jnp.zeros_like(acc_s)

    x = x_ref[0].astype(jnp.float32)   # (row_tile, 128)
    y = y_ref[0].astype(jnp.float32)

    def accumulate(xv, yv):
        prod = xv * yv
        both = xv + yv
        if acc_rows == 8:
            # Fold to a single (8,128) vreg with plain VALU adds; the sublane
            # reduce happens once in the finalize.
            acc_i[...] += prod.reshape(row_tile // 8, 8, _LANES).sum(axis=0)
            acc_s[...] += both.reshape(row_tile // 8, 8, _LANES).sum(axis=0)
        else:
            acc_i[...] += prod.sum(axis=0, keepdims=True)
            acc_s[...] += both.sum(axis=0, keepdims=True)

    if any_mask:
        # Only chunks that read past the end of the row axis need masking:
        # the ragged final chunk and (with a reduction split) phantom chunks.
        rows_rem = rows - (s * cps + c) * row_tile   # may be <= 0 (phantom)
        needs_mask = rows_rem < row_tile

        @pl.when(jnp.logical_not(needs_mask))
        def _():
            accumulate(x, y)

        @pl.when(needs_mask)
        def _():
            ridx = jax.lax.broadcasted_iota(jnp.int32, x.shape, 0)
            valid = ridx < rows_rem
            accumulate(jnp.where(valid, x, 0.0), jnp.where(valid, y, 0.0))
    else:
        accumulate(x, y)

    @pl.when(c == cps - 1)
    def _():
        oi_ref[...] = jnp.full(oi_ref.shape, jnp.sum(acc_i[...]),
                               dtype=oi_ref.dtype)
        os_ref[...] = jnp.full(os_ref.shape, jnp.sum(acc_s[...]),
                               dtype=os_ref.dtype)


def soft_dice_loss(logits, targets, *, row_tile=8192, n_splits=None):
    """Matches torch SoftDiceLoss.forward: no sigmoid, smooth=1, mean over N."""
    if logits.dtype == jnp.bool_:
        logits = logits.astype(jnp.float32)
    if targets.dtype == jnp.bool_:
        targets = targets.astype(jnp.float32)

    num = logits.shape[0]
    m1 = logits.reshape(num, -1)
    m2 = targets.reshape(num, -1)
    d = m1.shape[1]

    inter = jnp.zeros((num,), jnp.float32)
    ssum = jnp.zeros((num,), jnp.float32)

    d_main = (d // _LANES) * _LANES
    if d_main != d:
        # Fold the <128-lane tail with tiny XLA ops instead of padding both
        # full inputs through HBM.
        t1 = m1[:, d_main:].astype(jnp.float32)
        t2 = m2[:, d_main:].astype(jnp.float32)
        inter = inter + jnp.sum(t1 * t2, axis=1)
        ssum = ssum + jnp.sum(t1 + t2, axis=1)
        # TODO(synk): the aligned-prefix slice below still materialises an XLA
        # copy for unaligned D; a fully in-kernel lane-masked path would avoid it.
        m1 = m1[:, :d_main]
        m2 = m2[:, :d_main]

    rows = d_main // _LANES
    if rows > 0:
        # Metadata-only reshape of contiguous rows: (N, D) -> (N, D//128, 128).
        m1 = m1.reshape(num, rows, _LANES)
        m2 = m2.reshape(num, rows, _LANES)

        # Dtype-aware sublane alignment of the row tile (8 f32 / 16 bf16 / 32 i8).
        itemsize = min(m1.dtype.itemsize, m2.dtype.itemsize)
        sub = {1: 32, 2: 16}.get(itemsize, 8)

        rt = min(row_tile, rows)
        if rt < rows:
            rt = max(sub, (rt // sub) * sub)
            rt = min(rt, rows)
        n_chunks = pl.cdiv(rows, rt)

        if n_splits is None:
            # Tiny-batch heuristic: splitting the reduction lets both v7x
            # TensorCores work; it is harmless (same total work) on v5e/v6e.
            n_splits = 2 if (num == 1 and n_chunks >= 2) else 1
        n_splits = max(1, min(n_splits, n_chunks))
        cps = pl.cdiv(n_chunks, n_splits)

        acc_rows = 8 if rt % 8 == 0 else 1
        any_mask = (rows % rt != 0) or (n_splits * cps != n_chunks)

        if n_splits * cps == n_chunks:
            def chunk_idx(s, c):
                return s * cps + c
        else:
            # Clamp phantom chunks onto the last real chunk; they are fully
            # masked inside the kernel.
            def chunk_idx(s, c):
                return jnp.minimum(s * cps + c, n_chunks - 1)

        kernel = functools.partial(
            _soft_dice_kernel,
            rows=rows, row_tile=rt, acc_rows=acc_rows, any_mask=any_mask)

        out_sd = jax.ShapeDtypeStruct((num, n_splits, 1, _LANES), jnp.float32)
        ki, ks = pl.pallas_call(
            kernel,
            out_shape=(out_sd, out_sd),
            grid_spec=pltpu.PrefetchScalarGridSpec(
                num_scalar_prefetch=0,
                grid=(num, n_splits, cps),
                in_specs=[
                    pl.BlockSpec((1, rt, _LANES),
                                 lambda n, s, c: (n, chunk_idx(s, c), 0)),
                    pl.BlockSpec((1, rt, _LANES),
                                 lambda n, s, c: (n, chunk_idx(s, c), 0)),
                ],
                out_specs=[
                    pl.BlockSpec((1, 1, 1, _LANES), lambda n, s, c: (n, s, 0, 0)),
                    pl.BlockSpec((1, 1, 1, _LANES), lambda n, s, c: (n, s, 0, 0)),
                ],
                scratch_shapes=[
                    pltpu.VMEM((acc_rows, _LANES), jnp.float32),
                    pltpu.VMEM((acc_rows, _LANES), jnp.float32),
                ],
            ),
            compiler_params=pltpu.CompilerParams(
                dimension_semantics=("parallel", "parallel", "arbitrary"),
                vmem_limit_bytes=32 * 1024 * 1024,
            ),
        )(m1, m2)

        inter = inter + jnp.sum(ki[:, :, 0, 0], axis=1)
        ssum = ssum + jnp.sum(ks[:, :, 0, 0], axis=1)

    score = 2.0 * (inter + _SMOOTH) / (ssum + _SMOOTH)
    return 1.0 - jnp.sum(score) / num


def _soft_dice_loss_ref(logits, targets):
    num = logits.shape[0]
    m1 = logits.astype(jnp.float32).reshape(num, -1)
    m2 = targets.astype(jnp.float32).reshape(num, -1)
    inter = (m1 * m2).sum(1)
    score = 2.0 * (inter + 1.0) / (m1.sum(1) + m2.sum(1) + 1.0)
    return 1.0 - score.sum() / num


if __name__ == "__main__":
    key = jax.random.PRNGKey(0)
    k1, k2, k3, k4, k5, k6 = jax.random.split(key, 6)

    # Case 1: canonical small NCHW shape, f32, lane-aligned D (= 1024).
    logits = jax.random.uniform(k1, (2, 4, 16, 16), dtype=jnp.float32)
    targets = (jax.random.uniform(k2, (2, 4, 16, 16)) > 0.5).astype(jnp.float32)
    loss = jax.jit(soft_dice_loss)(logits, targets)
    jax.block_until_ready(loss)
    ref = _soft_dice_loss_ref(logits, targets)
    assert jnp.allclose(loss, ref, atol=1e-5, rtol=1e-5), (loss, ref)

    # Case 2: unaligned D (2400 -> 18 aligned rows + 96-lane tail), ragged
    # final chunk, 2-way reduction split with a clamped phantom chunk.
    l2 = jax.random.uniform(k3, (1, 6, 20, 20), dtype=jnp.float32)
    t2 = (jax.random.uniform(k4, (1, 6, 20, 20)) > 0.5).astype(jnp.float32)
    f2 = jax.jit(functools.partial(soft_dice_loss, row_tile=8, n_splits=2))
    loss2 = f2(l2, t2)
    jax.block_until_ready(loss2)
    ref2 = _soft_dice_loss_ref(l2, t2)
    assert jnp.allclose(loss2, ref2, atol=1e-5, rtol=1e-5), (loss2, ref2)

    # Case 3: bf16 streaming (native narrow dtype), multi-chunk reduction.
    l3 = jax.random.uniform(k5, (2, 16, 16, 16), dtype=jnp.float32).astype(jnp.bfloat16)
    t3 = (jax.random.uniform(k6, (2, 16, 16, 16)) > 0.5).astype(jnp.bfloat16)
    f3 = jax.jit(functools.partial(soft_dice_loss, row_tile=16))
    loss3 = f3(l3, t3)
    jax.block_until_ready(loss3)
    ref3 = _soft_dice_loss_ref(l3, t3)
    assert jnp.allclose(loss3, ref3, atol=1e-4, rtol=1e-4), (loss3, ref3)

    print("KERNEL_OK")
</pallas_src>

<mosaic_0001>
module attributes {stable_mosaic.version = 11 : i64} {
  func.func @_soft_dice_kernel(%arg0: i32, %arg1: i32, %arg2: i32, %arg3: memref<1x8x128xf32, #tpu.memory_space<vmem>>, %arg4: memref<1x8x128xf32, #tpu.memory_space<vmem>>, %arg5: memref<1x1x1x128xf32, #tpu.memory_space<vmem>>, %arg6: memref<1x1x1x128xf32, #tpu.memory_space<vmem>>, %arg7: memref<8x128xf32, #tpu.memory_space<vmem>>, %arg8: memref<8x128xf32, #tpu.memory_space<vmem>>) attributes {dimension_semantics = [#tpu.dimension_semantics<parallel>, #tpu.dimension_semantics<parallel>, #tpu.dimension_semantics<arbitrary>], iteration_bounds = array<i64: 2, 1, 1>, scalar_prefetch = 0 : i64, scratch_operands = 2 : i64, tpu.core_type = #tpu.core_type<tc>, window_params = [{transform_indices = @transform_0, window_bounds = array<i64: 1, 8, 128>}, {transform_indices = @transform_1, window_bounds = array<i64: 1, 8, 128>}, {transform_indices = @transform_2, window_bounds = array<i64: 1, 1, 1, 128>}, {transform_indices = @transform_3, window_bounds = array<i64: 1, 1, 1, 128>}]} {
    %c0_i32 = arith.constant 0 : i32
    %0 = arith.cmpi eq, %arg2, %c0_i32 : i32
    %1 = arith.extui %0 : i1 to i32
    %c0_i32_0 = arith.constant 0 : i32
    %2 = arith.cmpi ne, %1, %c0_i32_0 : i32
    scf.if %2 {
      %cst_17 = arith.constant 0.000000e+00 : f32
      %22 = vector.broadcast %cst_17 : f32 to vector<8x128xf32>
      %c0_18 = arith.constant 0 : index
      %c0_19 = arith.constant 0 : index
      %23 = vector.load %arg7[%c0_18, %c0_19] : memref<8x128xf32, #tpu.memory_space<vmem>>, vector<8x128xf32>
      tpu.vector_store %arg7[%c0_18, %c0_19], %22 {strides = array<i32>} : memref<8x128xf32, #tpu.memory_space<vmem>>, vector<8x128xf32>,
      %cst_20 = arith.constant 0.000000e+00 : f32
      %24 = vector.broadcast %cst_20 : f32 to vector<8x128xf32>
      %c0_21 = arith.constant 0 : index
      %c0_22 = arith.constant 0 : index
      %25 = vector.load %arg8[%c0_21, %c0_22] : memref<8x128xf32, #tpu.memory_space<vmem>>, vector<8x128xf32>
      tpu.vector_store %arg8[%c0_21, %c0_22], %24 {strides = array<i32>} : memref<8x128xf32, #tpu.memory_space<vmem>>, vector<8x128xf32>,
    } else {
    }
    %c0 = arith.constant 0 : index
    %c0_1 = arith.constant 0 : index
    %c0_2 = arith.constant 0 : index
    %3 = vector.load %arg3[%c0, %c0_1, %c0_2] : memref<1x8x128xf32, #tpu.memory_space<vmem>>, vector<1x8x128xf32>
    %4 = vector.shape_cast %3 : vector<1x8x128xf32> to vector<8x128xf32>
    %c0_3 = arith.constant 0 : index
    %c0_4 = arith.constant 0 : index
    %c0_5 = arith.constant 0 : index
    %5 = vector.load %arg4[%c0_3, %c0_4, %c0_5] : memref<1x8x128xf32, #tpu.memory_space<vmem>>, vector<1x8x128xf32>
    %6 = vector.shape_cast %5 : vector<1x8x128xf32> to vector<8x128xf32>
    %7 = arith.mulf %4, %6 : vector<8x128xf32>
    %8 = arith.addf %4, %6 : vector<8x128xf32>
    %c0_6 = arith.constant 0 : index
    %c0_7 = arith.constant 0 : index
    %9 = vector.load %arg7[%c0_6, %c0_7] : memref<8x128xf32, #tpu.memory_space<vmem>>, vector<8x128xf32>
    %10 = vector.shape_cast %7 : vector<8x128xf32> to vector<1x8x128xf32>
    %cst = arith.constant dense<0.000000e+00> : vector<8x128xf32>
    %11 = vector.multi_reduction <add>, %10, %cst [0] : vector<1x8x128xf32> to vector<8x128xf32>
    %12 = arith.addf %9, %11 : vector<8x128xf32>
    %c0_8 = arith.constant 0 : index
    %c0_9 = arith.constant 0 : index
    %13 = vector.load %arg7[%c0_8, %c0_9] : memref<8x128xf32, #tpu.memory_space<vmem>>, vector<8x128xf32>
    tpu.vector_store %arg7[%c0_8, %c0_9], %12 {strides = array<i32>} : memref<8x128xf32, #tpu.memory_space<vmem>>, vector<8x128xf32>,
    %c0_10 = arith.constant 0 : index
    %c0_11 = arith.constant 0 : index
    %14 = vector.load %arg8[%c0_10, %c0_11] : memref<8x128xf32, #tpu.memory_space<vmem>>, vector<8x128xf32>
    %15 = vector.shape_cast %8 : vector<8x128xf32> to vector<1x8x128xf32>
    %cst_12 = arith.constant dense<0.000000e+00> : vector<8x128xf32>
    %16 = vector.multi_reduction <add>, %15, %cst_12 [0] : vector<1x8x128xf32> to vector<8x128xf32>
    %17 = arith.addf %14, %16 : vector<8x128xf32>
    %c0_13 = arith.constant 0 : index
    %c0_14 = arith.constant 0 : index
    %18 = vector.load %arg8[%c0_13, %c0_14] : memref<8x128xf32, #tpu.memory_space<vmem>>, vector<8x128xf32>
    tpu.vector_store %arg8[%c0_13, %c0_14], %17 {strides = array<i32>} : memref<8x128xf32, #tpu.memory_space<vmem>>, vector<8x128xf32>,
    %c0_i32_15 = arith.constant 0 : i32
    %19 = arith.cmpi eq, %arg2, %c0_i32_15 : i32
    %20 = arith.extui %19 : i1 to i32
    %c0_i32_16 = arith.constant 0 : i32
    %21 = arith.cmpi ne, %20, %c0_i32_16 : i32
    scf.if %21 {
      %c0_17 = arith.constant 0 : index
      %c0_18 = arith.constant 0 : index
      %22 = vector.load %arg7[%c0_17, %c0_18] : memref<8x128xf32, #tpu.memory_space<vmem>>, vector<8x128xf32>
      %23 = vector.shape_cast %22 : vector<8x128xf32> to vector<1x8x128xf32>
      %cst_19 = arith.constant dense<0.000000e+00> : vector<1xf32>
      %24 = vector.multi_reduction <add>, %23, %cst_19 [1, 2] : vector<1x8x128xf32> to vector<1xf32>
      %25 = vector.shape_cast %24 : vector<1xf32> to vector<1x1x1xf32>
      %26 = vector.extract %25[0, 0, 0] : f32 from vector<1x1x1xf32>
      %27 = vector.broadcast %26 : f32 to vector<1x1x1x128xf32>
      %c0_20 = arith.constant 0 : index
      %c0_21 = arith.constant 0 : index
      %c0_22 = arith.constant 0 : index
      %c0_23 = arith.constant 0 : index
      %28 = vector.load %arg5[%c0_20, %c0_21, %c0_22, %c0_23] : memref<1x1x1x128xf32, #tpu.memory_space<vmem>>, vector<1x1x1x128xf32>
      tpu.vector_store %arg5[%c0_20, %c0_21, %c0_22, %c0_23], %27 {strides = array<i32>} : memref<1x1x1x128xf32, #tpu.memory_space<vmem>>, vector<1x1x1x128xf32>,
      %c0_24 = arith.constant 0 : index
      %c0_25 = arith.constant 0 : index
      %29 = vector.load %arg8[%c0_24, %c0_25] : memref<8x128xf32, #tpu.memory_space<vmem>>, vector<8x128xf32>
      %30 = vector.shape_cast %29 : vector<8x128xf32> to vector<1x8x128xf32>
      %cst_26 = arith.constant dense<0.000000e+00> : vector<1xf32>
      %31 = vector.multi_reduction <add>, %30, %cst_26 [1, 2] : vector<1x8x128xf32> to vector<1xf32>
      %32 = vector.shape_cast %31 : vector<1xf32> to vector<1x1x1xf32>
      %33 = vector.extract %32[0, 0, 0] : f32 from vector<1x1x1xf32>
      %34 = vector.broadcast %33 : f32 to vector<1x1x1x128xf32>
      %c0_27 = arith.constant 0 : index
      %c0_28 = arith.constant 0 : index
      %c0_29 = arith.constant 0 : index
      %c0_30 = arith.constant 0 : index
      %35 = vector.load %arg6[%c0_27, %c0_28, %c0_29, %c0_30] : memref<1x1x1x128xf32, #tpu.memory_space<vmem>>, vector<1x1x1x128xf32>
      tpu.vector_store %arg6[%c0_27, %c0_28, %c0_29, %c0_30], %34 {strides = array<i32>} : memref<1x1x1x128xf32, #tpu.memory_space<vmem>>, vector<1x1x1x128xf32>,
    } else {
    }
    return
  }
  func.func @transform_0(%arg0: i32, %arg1: i32, %arg2: i32) -> (i32, i32, i32) {
    %c1_i32 = arith.constant 1 : i32
    %0 = arith.muli %arg1, %c1_i32 : i32
    %1 = arith.addi %0, %arg2 : i32
    %c0_i32 = arith.constant 0 : i32
    %c0_i32_0 = arith.constant 0 : i32
    return %arg0, %1, %c0_i32 : i32, i32, i32
  }
  func.func @transform_1(%arg0: i32, %arg1: i32, %arg2: i32) -> (i32, i32, i32) {
    %c1_i32 = arith.constant 1 : i32
    %0 = arith.muli %arg1, %c1_i32 : i32
    %1 = arith.addi %0, %arg2 : i32
    %c0_i32 = arith.constant 0 : i32
    %c0_i32_0 = arith.constant 0 : i32
    return %arg0, %1, %c0_i32 : i32, i32, i32
  }
  func.func @transform_2(%arg0: i32, %arg1: i32, %arg2: i32) -> (i32, i32, i32, i32) {
    %c0_i32 = arith.constant 0 : i32
    %c0_i32_0 = arith.constant 0 : i32
    %c0_i32_1 = arith.constant 0 : i32
    return %arg0, %arg1, %c0_i32, %c0_i32_0 : i32, i32, i32, i32
  }
  func.func @transform_3(%arg0: i32, %arg1: i32, %arg2: i32) -> (i32, i32, i32, i32) {
    %c0_i32 = arith.constant 0 : i32
    %c0_i32_0 = arith.constant 0 : i32
    %c0_i32_1 = arith.constant 0 : i32
    return %arg0, %arg1, %c0_i32, %c0_i32_0 : i32, i32, i32, i32
  }
}

</mosaic_0001>

<bundles_post_ra>
// kernel: soft_dice_loss.1
= control target key start
LH: loop header
LB: loop body
LE: loop exit
PB: predicated region body
PF: predicated region fallthrough
CT: control target
= control target key end

     0   :  { %s508_s12 = smov 0   ;;  %s510_s13 = smov 0   ;;  %s552_s0 = inlined_call_operand.vmem [shape: f32[2,8,128], index: 0, kind: input, shape index: {}]   ;;  %s553_s1 = inlined_call_operand.vmem [shape: f32[2,8,128], index: 1, kind: input, shape index: {}]   ;;  %s554_s2 = inlined_call_operand.vmem [shape: f32[2,1,1,128], index: 2, kind: output, shape index: {0}]   ;;  %s555_s3 = inlined_call_operand.vmem [shape: f32[2,1,1,128], index: 3, kind: output, shape index: {1}]  }
   0x1   :  { %s512_s14 = smov 0  }
   0x2 LB: > { %s33_s15 = sadd.s32 1, %s482_s13  ;;  %p431_p0 = scmp.ge.s32.totalorder %s486_s14, 1  ;;  %s486_s14 = sphi %s512_s14, %s14_s14   ;;  %s482_s13 = sphi %s510_s13, %s557_s13   ;;  %s478_s12 = sphi %s508_s12, %s556_s12  }
   0x3   : > { %p35_p1 = scmp.ge.s32.totalorder %s33_s15, 2  ;;  %p189_p2 = scmp.lt.s32.totalorder %s486_s14, 3 }
   0x5   : > { %s559_s15 = smov (%p35_p1, %s33_s15), 0  ;;  %p190_p3 = pnand %p431_p0, %p189_p2 }
   0x6   : > { %p232_p4 = scmp.lt.s32.totalorder (!%p190_p3), %s478_s12, 1 }
   0x7   : > { %193 = sbr.rel (%p190_p3) target bundleno = 207 (0xcf), region = 28 }
   0xc   : > { %s561_s12 = smov (!%p232_p4, %s478_s12), 1 }
   0xd   : > { %s432_s16 = sshll.u32 %s561_s12, 3  ;;  %s254_s25 = scalar_lea.vmem %s554_s2, %s561_s12 }
   0xe   : > { %s238_s19 = scalar_lea.vmem %s552_s0, %s432_s16  ;;  %s247_s22 = scalar_lea.vmem %s553_s1, %s432_s16 }
   0xf   : > { %v267_v0 = vld [vmem:[%s238_s19] sm:$0xff]  ;;  %s260_s29 = scalar_lea.vmem %s555_s3, %s561_s12 }
  0x10   : > { %v268_v1 = vld [vmem:[%s247_s22] sm:$0xff] }
  0x11   : > { %v269_v2 = vmul.f32 %v268_v1, %v267_v0  ;;  %v270_v3 = vadd.f32 %v268_v1, %v267_v0 }
  0x13   : > { %283 = vadd.xlane.f32.xlu0 %v269_v2 }
  0x1b   : > { %295 = vadd.xlane.f32.xlu0 %v270_v3 }
  0x86   : > { %v284_v4 = vpop.xlane.xlu0 %283 }
  0x87   : > { %v285_v5 = vrot.slane %v284_v4, 4 }
  0x89   : > { %v286_v6 = vadd.f32 %v285_v5, %v284_v4 }
  0x8b   : > { %v287_v7 = vrot.slane %v286_v6, 2 }
  0x8d   : > { %v288_v8 = vadd.f32 %v287_v7, %v286_v6 }
  0x8e   : > { %v296_v9 = vpop.xlane.xlu0 %295 }
  0x8f   : > { %v297_v10 = vrot.slane %v296_v9, 4  ;;  %v289_v11 = vrot.slane %v288_v8, 1 }
  0x91   : > { %v298_v12 = vadd.f32 %v297_v10, %v296_v9  ;;  %v290_v13 = vadd.f32 %v289_v11, %v288_v8 }
  0x93   : > { %v299_v14 = vrot.slane %v298_v12, 2  ;;  %436 = vpush %v290_v13 }
  0x95   : > { %v300_v15 = vadd.f32 %v299_v14, %v298_v12 }
  0x97   : > { %v301_v16 = vrot.slane %v300_v15, 1 }
  0x99   : > { %v302_v17 = vadd.f32 %v301_v16, %v300_v15 }
  0x9b   : > { %438 = vpush %v302_v17 }
  0xc4   : > { %s437_s26 = spop %436 }
  0xc5   : > { %v292_v18 = vstv %s437_s26 }
  0xc6   : > { %293 = vst [vmem:[%s254_s25] sm:$0x1] %v292_v18 }
  0xcc   : > { %s439_s30 = spop %438 }
  0xcd   : > { %v304_v19 = vstv %s439_s30 }
  0xce   : > { %305 = vst [vmem:[%s260_s29] sm:$0x1] %v304_v19 }
  0xcf PF: > { %s14_s14 = sadd.s32 1, %s486_s14   ;;  %s556_s12 = smov %s482_s13 }
  0xd0   : > { %p11_p5 = scmp.ge.s32.totalorder %s14_s14, 4   ;;  %s557_s13 = smov %s559_s15 }
  0xd2   :  { %13 = sbr.rel (!%p11_p5) target bundleno = 2 (0x2), region = 81 }

</bundles_post_ra>
